<compile_context>
chip_gen: v7x
topology: tpu7x:2x2x1
jax: 0.10.0
libtpu: 0.0.40
codegen_flags: <defaults>
</compile_context>

<pallas_src>
import jax
import jax.numpy as jnp
from jax import lax
from jax.experimental import pallas as pl
from jax.experimental.pallas import tpu as pltpu


def _round_up(x: int, m: int) -> int:
    return ((x + m - 1) // m) * m


def _bert_pooler_kernel(x_ref, w_ref, b_ref, o_ref):
    # x_ref: (TB, H)      CLS-token activations (gathered by the BlockSpec DMA)
    # w_ref: (H, H)       dense weight in torch [out, in] layout
    # b_ref: (1, H)       dense bias
    # o_ref: (TB, H)      pooled output
    x = x_ref[...].astype(w_ref.dtype)            # bf16 weights => bf16 MXU inputs
    # y = x @ W^T : contract both operands on their last dim (MXU trans-B matmul),
    # accumulate in f32.
    y = lax.dot_general(
        x, w_ref[...],
        dimension_numbers=(((1,), (1,)), ((), ())),
        preferred_element_type=jnp.float32,
    )
    y = y + b_ref[...].astype(jnp.float32)        # (1, H) broadcasts over TB rows
    o_ref[...] = jnp.tanh(y).astype(o_ref.dtype)  # tanh -> EUP slot, ~free


def bert_pooler(hidden_states, weight, bias, *, block_b: int = 256):
    """BertPooler forward.

    hidden_states: (B, S, H); weight: (H, H) torch [out, in] layout; bias: (H,).
    Returns tanh(hidden_states[:, 0] @ weight.T + bias), dtype = hidden_states.dtype.
    """
    B, S, H = hidden_states.shape
    assert H % 128 == 0, "hidden_size must be a multiple of 128 (TPU lane width)"
    assert weight.shape == (H, H) and bias.shape == (H,)

    out_dtype = hidden_states.dtype

    # Metadata-only reshape: row b of x2d is [tok0 | tok1 | ... | tok_{S-1}].
    # The input BlockSpec below reads only the first H columns of each row tile,
    # i.e. exactly the CLS token — the rest of the sequence is never DMA'd.
    x2d = hidden_states.reshape(B, S * H)
    b2 = bias.reshape(1, H)

    # Sublane minimum for the activation/output tiles (8 f32, 16 bf16, 32 int8).
    sub = max(8, 32 // jnp.dtype(hidden_states.dtype).itemsize)
    # >= 2 grid steps when the batch allows it (keeps both v7x TCs busy), capped
    # at block_b so v6e/v5e tiles stay big enough to amortize ~0.35us/step
    # pipeline overhead.
    tb = sub if B <= sub else min(block_b, _round_up(pl.cdiv(B, 2), sub))

    isz = lambda dt: jnp.dtype(dt).itemsize
    cost = pl.CostEstimate(
        flops=2 * B * H * H,
        transcendentals=B * H,  # tanh
        bytes_accessed=(B * H * isz(hidden_states.dtype)   # CLS rows only
                        + H * H * isz(weight.dtype)
                        + H * isz(bias.dtype)
                        + B * H * isz(out_dtype)),
    )

    def _call(single_buffer_params: bool):
        # Constant-index weight/bias blocks don't need double buffering.
        mode = {"pipeline_mode": pl.Buffered(1)} if single_buffer_params else {}
        return pl.pallas_call(
            _bert_pooler_kernel,
            out_shape=jax.ShapeDtypeStruct((B, H), out_dtype),
            grid_spec=pltpu.PrefetchScalarGridSpec(
                num_scalar_prefetch=0,
                grid=(pl.cdiv(B, tb),),
                in_specs=[
                    # Fused CLS gather: tb rows x first H columns of (B, S*H).
                    pl.BlockSpec((tb, H), lambda i: (i, 0)),
                    # Weight & bias: VMEM-resident across the whole grid.
                    pl.BlockSpec((H, H), lambda i: (0, 0), **mode),
                    pl.BlockSpec((1, H), lambda i: (0, 0), **mode),
                ],
                out_specs=pl.BlockSpec((tb, H), lambda i: (i, 0)),
            ),
            compiler_params=pltpu.CompilerParams(
                dimension_semantics=("parallel",),   # megacore: split batch tiles
            ),
            cost_estimate=cost,
        )(x2d, weight, b2)

    try:
        return _call(True)
    except Exception:
        # pipeline_mode / pl.Buffered(1) unsupported on this jax version:
        # fall back to default double-buffering of the constant weight & bias.
        return _call(False)


def _reference(hidden_states, weight, bias):
    first_token = hidden_states[:, 0]
    return jnp.tanh(first_token @ weight.T + bias)


if __name__ == "__main__":
    # Small synthetic config (lane-aligned hidden size).  batch=20 exercises
    # both a multi-step grid (2 batch tiles) and a partial (masked) tail block.
    batch = 20
    seq = 8
    hidden = 128

    key = jax.random.PRNGKey(0)
    k_h, k_w, k_b = jax.random.split(key, 3)

    hidden_states = jax.random.normal(k_h, (batch, seq, hidden), jnp.float32)
    # Parameters in torch [out, in] layout; stored once as bf16 ("load time"
    # conversion, outside the forward path) so the dominant weight DMA is halved.
    weight_f32 = 0.02 * jax.random.normal(k_w, (hidden, hidden), jnp.float32)
    bias_f32 = 0.02 * jax.random.normal(k_b, (hidden,), jnp.float32)
    weight = weight_f32.astype(jnp.bfloat16)
    bias = bias_f32.astype(jnp.bfloat16)

    out = jax.block_until_ready(bert_pooler(hidden_states, weight, bias))

    ref = _reference(hidden_states, weight_f32, bias_f32)
    assert out.shape == (batch, hidden)
    assert out.dtype == hidden_states.dtype
    # bf16 parameters / bf16 MXU inputs with f32 accumulation vs f32 reference.
    assert jnp.allclose(out, ref, atol=1e-2, rtol=1e-2), "mismatch vs JAX reference"

    print("KERNEL_OK")
</pallas_src>

<mosaic_0001>
module attributes {stable_mosaic.version = 11 : i64} {
  func.func @_bert_pooler_kernel(%arg0: i32, %arg1: memref<16x128xf32, #tpu.memory_space<vmem>>, %arg2: memref<128x128xbf16, #tpu.memory_space<vmem>>, %arg3: memref<1x128xbf16, #tpu.memory_space<vmem>>, %arg4: memref<16x128xf32, #tpu.memory_space<vmem>>) attributes {dimension_semantics = [#tpu.dimension_semantics<parallel>], iteration_bounds = array<i64: 2>, scalar_prefetch = 0 : i64, scratch_operands = 0 : i64, tpu.core_type = #tpu.core_type<tc>, window_params = [{transform_indices = @transform_0, window_bounds = array<i64: 16, 128>}, {pipeline_mode = #tpu.pipeline_mode<synchronous>, transform_indices = @transform_1, window_bounds = array<i64: 128, 128>}, {pipeline_mode = #tpu.pipeline_mode<synchronous>, transform_indices = @transform_2, window_bounds = array<i64: 1, 128>}, {transform_indices = @transform_3, window_bounds = array<i64: 16, 128>}]} {
    %c0 = arith.constant 0 : index
    %c0_0 = arith.constant 0 : index
    %0 = vector.load %arg1[%c0, %c0_0] : memref<16x128xf32, #tpu.memory_space<vmem>>, vector<16x128xf32>
    %1 = arith.truncf %0 : vector<16x128xf32> to vector<16x128xbf16>
    %c0_1 = arith.constant 0 : index
    %c0_2 = arith.constant 0 : index
    %2 = vector.load %arg2[%c0_1, %c0_2] : memref<128x128xbf16, #tpu.memory_space<vmem>>, vector<128x128xbf16>
    %cst = arith.constant dense<0.000000e+00> : vector<16x128xf32>
    %3 = tpu.matmul %1, %2, %cst {dimension_numbers = #tpu.dot_dimension_numbers<[1], [1], [0], [0], [0, 0, 1, 0], [], []>} : vector<16x128xbf16>, vector<128x128xbf16>, vector<16x128xf32> -> vector<16x128xf32>
    %c0_3 = arith.constant 0 : index
    %c0_4 = arith.constant 0 : index
    %4 = vector.load %arg3[%c0_3, %c0_4] : memref<1x128xbf16, #tpu.memory_space<vmem>>, vector<1x128xbf16>
    %5 = arith.extf %4 : vector<1x128xbf16> to vector<1x128xf32>
    %6 = vector.broadcast %5 : vector<1x128xf32> to vector<16x128xf32>
    %7 = arith.addf %3, %6 : vector<16x128xf32>
    %8 = math.tanh %7 : vector<16x128xf32>
    %c0_5 = arith.constant 0 : index
    %c0_6 = arith.constant 0 : index
    %9 = vector.load %arg4[%c0_5, %c0_6] : memref<16x128xf32, #tpu.memory_space<vmem>>, vector<16x128xf32>
    tpu.vector_store %arg4[%c0_5, %c0_6], %8 {strides = array<i32>} : memref<16x128xf32, #tpu.memory_space<vmem>>, vector<16x128xf32>,
    return
  }
  func.func @transform_0(%arg0: i32) -> (i32, i32) {
    %c0_i32 = arith.constant 0 : i32
    %c0_i32_0 = arith.constant 0 : i32
    return %arg0, %c0_i32 : i32, i32
  }
  func.func @transform_1(%arg0: i32) -> (i32, i32) {
    %c0_i32 = arith.constant 0 : i32
    %c0_i32_0 = arith.constant 0 : i32
    %c0_i32_1 = arith.constant 0 : i32
    return %c0_i32, %c0_i32_0 : i32, i32
  }
  func.func @transform_2(%arg0: i32) -> (i32, i32) {
    %c0_i32 = arith.constant 0 : i32
    %c0_i32_0 = arith.constant 0 : i32
    %c0_i32_1 = arith.constant 0 : i32
    return %c0_i32, %c0_i32_0 : i32, i32
  }
  func.func @transform_3(%arg0: i32) -> (i32, i32) {
    %c0_i32 = arith.constant 0 : i32
    %c0_i32_0 = arith.constant 0 : i32
    return %arg0, %c0_i32 : i32, i32
  }
}

module attributes {stable_mosaic.version = 11 : i64} {
  func.func @_bert_pooler_kernel(%arg0: i32, %arg1: memref<16x128xf32, #tpu.memory_space<vmem>>, %arg2: memref<128x128xbf16, #tpu.memory_space<vmem>>, %arg3: memref<1x128xbf16, #tpu.memory_space<vmem>>, %arg4: memref<16x128xf32, #tpu.memory_space<vmem>>) attributes {dimension_semantics = [#tpu.dimension_semantics<parallel>], iteration_bounds = array<i64: 2>, scalar_prefetch = 0 : i64, scratch_operands = 0 : i64, tpu.core_type = #tpu.core_type<tc>, window_params = [{transform_indices = @transform_0, window_bounds = array<i64: 16, 128>}, {pipeline_mode = #tpu.pipeline_mode<synchronous>, transform_indices = @transform_1, window_bounds = array<i64: 128, 128>}, {pipeline_mode = #tpu.pipeline_mode<synchronous>, transform_indices = @transform_2, window_bounds = array<i64: 1, 128>}, {transform_indices = @transform_3, window_bounds = array<i64: 16, 128>}]} {
    %c0 = arith.constant 0 : index
    %c0_0 = arith.constant 0 : index
    %0 = vector.load %arg1[%c0, %c0_0] : memref<16x128xf32, #tpu.memory_space<vmem>>, vector<16x128xf32>
    %1 = arith.truncf %0 : vector<16x128xf32> to vector<16x128xbf16>
    %c0_1 = arith.constant 0 : index
    %c0_2 = arith.constant 0 : index
    %2 = vector.load %arg2[%c0_1, %c0_2] : memref<128x128xbf16, #tpu.memory_space<vmem>>, vector<128x128xbf16>
    %cst = arith.constant dense<0.000000e+00> : vector<16x128xf32>
    %3 = tpu.matmul %1, %2, %cst {dimension_numbers = #tpu.dot_dimension_numbers<[1], [1], [0], [0], [0, 0, 1, 0], [], []>} : vector<16x128xbf16>, vector<128x128xbf16>, vector<16x128xf32> -> vector<16x128xf32>
    %c0_3 = arith.constant 0 : index
    %c0_4 = arith.constant 0 : index
    %4 = vector.load %arg3[%c0_3, %c0_4] : memref<1x128xbf16, #tpu.memory_space<vmem>>, vector<1x128xbf16>
    %5 = arith.extf %4 : vector<1x128xbf16> to vector<1x128xf32>
    %6 = vector.broadcast %5 : vector<1x128xf32> to vector<16x128xf32>
    %7 = arith.addf %3, %6 : vector<16x128xf32>
    %8 = math.tanh %7 : vector<16x128xf32>
    %c0_5 = arith.constant 0 : index
    %c0_6 = arith.constant 0 : index
    %9 = vector.load %arg4[%c0_5, %c0_6] : memref<16x128xf32, #tpu.memory_space<vmem>>, vector<16x128xf32>
    tpu.vector_store %arg4[%c0_5, %c0_6], %8 {strides = array<i32>} : memref<16x128xf32, #tpu.memory_space<vmem>>, vector<16x128xf32>,
    return
  }
  func.func @transform_0(%arg0: i32) -> (i32, i32) {
    %c0_i32 = arith.constant 0 : i32
    %c0_i32_0 = arith.constant 0 : i32
    return %arg0, %c0_i32 : i32, i32
  }
  func.func @transform_1(%arg0: i32) -> (i32, i32) {
    %c0_i32 = arith.constant 0 : i32
    %c0_i32_0 = arith.constant 0 : i32
    %c0_i32_1 = arith.constant 0 : i32
    return %c0_i32, %c0_i32_0 : i32, i32
  }
  func.func @transform_2(%arg0: i32) -> (i32, i32) {
    %c0_i32 = arith.constant 0 : i32
    %c0_i32_0 = arith.constant 0 : i32
    %c0_i32_1 = arith.constant 0 : i32
    return %c0_i32, %c0_i32_0 : i32, i32
  }
  func.func @transform_3(%arg0: i32) -> (i32, i32) {
    %c0_i32 = arith.constant 0 : i32
    %c0_i32_0 = arith.constant 0 : i32
    return %arg0, %c0_i32 : i32, i32
  }
}

</mosaic_0001>

<bundles_post_ra>
// kernel: tpu_custom_call.1
= control target key start
LH: loop header
LB: loop body
LE: loop exit
PB: predicated region body
PF: predicated region fallthrough
CT: control target
= control target key end

     0   :  { %8 = vsyncpa [#allocation3], 0  ;;  %s962_s0 = inlined_call_operand.hbm [shape: f32[20,1024], index: 0, kind: input, shape index: {}]   ;;  %s963_s1 = inlined_call_operand.hbm [shape: bf16[128,128], index: 1, kind: input, shape index: {}]   ;;  %s964_s2 = inlined_call_operand.vmem [shape: bf16[1,128], index: 2, kind: input, shape index: {}]   ;;  %s965_s3 = inlined_call_operand.hbm [shape: f32[20,128], index: 3, kind: output, shape index: {}]  }
   0x1   :  { %10 = vsyncpa [#allocation3 + $0x1], 0 }
   0x2   :  { %11 = vsyncpa [#allocation6], 0 }
   0x3   :  { %12 = vsyncpa [#allocation4], 0 }
   0x4   :  { %14 = vsyncpa [#allocation4 + $0x1], 0  ;;  %s739_s12 = smov 0   ;;  %s741_s13 = smov 0  }
   0x5   :  { %s743_s14 = smov 0   ;;  %s745_s15 = smov 0  }
   0x6 LB: > { %s760_s16 = sadd.s32 4294967295, %s705_s15   ;;  %s443_s17 = sadd.s32 4294967294, %s705_s15   ;;  %s705_s15 = sphi %s745_s15, %s985_s15   ;;  %s701_s14 = sphi %s743_s14, %s984_s14   ;;  %s697_s13 = sphi %s741_s13, %s983_s13   ;;  %s693_s12 = sphi %s739_s12, %s982_s12  }
   0x7   : > { %s764_s18 = sadd.s32 1, %s705_s15   ;;  %s27_s19 = sadd.s32 1, %s701_s14 }
   0x8   : > { %s24_s20 = ssub.s32 %s705_s15, %s764_s18  ;;  %p34_p0 = scmp.ne.s32.totalorder %s701_s14, %s697_s13 }
   0x9   : > { %p25_p1 = scmp.eq.s32.totalorder %s24_s20, 0  ;;  %p35_p2 = scmp.eq.s32.totalorder %s705_s15, 0 }
   0xa   : > { %p40_p3 = scmp.ne.s32.totalorder %s697_s13, %s693_s12  ;;  %p966_p4 = scmp.eq.s32.totalorder %s760_s16, 0 }
   0xb   : > { %s776_s21 = scalar_select %p25_p1, %s701_s14, %s27_s19  }
   0xc   : > { %p778_p5 = por %p35_p2, %p34_p0  ;;  %p784_p6 = por %p966_p4, %p40_p3 }
   0xd   : > { %p106_p7 = scmp.eq.s32.totalorder %s760_s16, 1  ;;  %p112_p8 = scmp.eq.s32.totalorder %s443_s17, 1 }
   0xe   : > { %s969_s22 = scalar_select %p778_p5, 1, 0 }
   0xf   : > { %s970_s23 = scalar_select %p784_p6, 1, 0 }
  0x10   : > { %p444_p9 = scmp.ge.s32.totalorder %s705_s15, 1  ;;  %p119_p10 = scmp.lt.s32.totalorder %s705_s15, 3 }
  0x11   : > { %p791_p11 = por %p106_p7, %p34_p0  ;;  %p795_p12 = por %p112_p8, %p40_p3 }
  0x12   : > { %p799_p13 = pnand %p444_p9, %p119_p10  ;;  %s707_s27 = smov [#allocation5]  }
  0x13   : > { %s971_s24 = scalar_select %p791_p11, 1, 0 }
  0x14   : > { %s972_s25 = scalar_select %p795_p12, 1, 0 }
  0x15   : > { %s973_s26 = scalar_select %p799_p13, 1, 0 }
  0x16   : > { %p514_p1 = pneg %p799_p13  ;;  %s131_s28 = sshll.u32 %s707_s27, 4  ;;  %s132_s28 = int_to_ptr.vmem [resolvable:$true] %s131_s28 }
  0x17   : > { %s579_s5 = scalar_lea.hbm %s963_s1, 1024 }
  0x18   : > { %p807_p2 = pnand %p514_p1, %p966_p4  ;;  %p580_p0 = scmp.ne.s32.totalorder %s963_s1, %s579_s5 }
  0x19   : > { %p586_p9 = scmp.lt.u32.totalorder %s579_s5, %s963_s1 }
  0x1a   : > { %p581_p3 = pneg %p807_p2 }
  0x1c   : > { %p582_p7 = pnand %p581_p3, %p580_p0 }
  0x1e   : > { %p583_p8 = pneg %p582_p7 }
  0x20   : > { %p588_p10 = pnand %p586_p9, %p583_p8 }
  0x22   : > { %591 = shalt.err (!%p588_p10)
}
  0x23   : > { %s592_s10 = scalar_lea.vmem %s132_s28, 1024  ;;  %p600_p11 = scmp.lt.s32.totalorder %s132_s28, %s132_s28 }
  0x24   : > { %p593_p1 = scmp.ne.s32.totalorder %s132_s28, %s592_s10  ;;  %p601_p6 = scmp.lt.s32.totalorder %s592_s10, %s592_s10 }
  0x26   : > { %p595_p4 = pnand %p593_p1, %p581_p3  ;;  %p602_p13 = por %p601_p6, %p600_p11 }
  0x28   : > { %p596_p12 = pneg %p595_p4 }
  0x2a   : > { %p603_p5 = pnand %p602_p13, %p596_p12 }
  0x2c   : > { %606 = shalt.err (!%p603_p5)
}
  0x2d   : > { %s708_s11 = smov 64   ;;  %s709_s17 = smov 4  }
  0x2e   : > { %517 = dma.hbm_to_vmem [thread:$0]  (!%p807_p2), %s963_s1, 1024, %s132_s28, [#allocation6], %s708_s11, %s708_s11, %s709_s17  }
  0x2f   : > { %p446_p0 = scmp.ge.s32.totalorder %s705_s15, 2 }
  0x30   : > { %p975_p4 = scmp.ne.s32.totalorder (!%p446_p0), %s969_s22, 0 }
  0x31   : > { %144 = sbr.rel (%p446_p0) target bundleno = 92 (0x5c), region = 24 }
  0x38   : > { %147 = sbr.rel (!%p975_p4) target bundleno = 92 (0x5c), region = 28  ;;  %s148_s27 = sand.u32 (%p975_p4), 1, %s701_s14  }
  0x39   : > { %s448_s30 = sshll.u32 (%p975_p4), %s705_s15, 1  ;;  %s447_s4 = sshll.u32 (%p975_p4), %s148_s27, 4 }
  0x3a   : > { %s154_s5 = ssub.s32 (%p975_p4), 3, %s448_s30  ;;  %s837_s6 = scalar_lea.sflag (%p975_p4), [#allocation3], %s148_s27 }
  0x3b   : > { %p155_p5 = scmp.lt.s32.totalorder (%p975_p4), %s154_s5, 2  ;;  %s152_s7 = scalar_lea.vmem (%p975_p4), [#allocation2], %s447_s4 }
  0x3f   : > { %s987_s5 = smov (!%p155_p5, %s154_s5), 2 }
  0x40   : > { %s834_s29 = sshll.u32 %s987_s5, 7 }
  0x41   : > { %s159_s28 = ssub.s32 256, %s834_s29 }
  0x42   : > { %160 = vsyncadd %s837_s6, %s159_s28  ;;  %p450_p6 = scmp.ne.s32.totalorder %s834_s29, 0  ;;  %s477_s22 = sshll.u32 %s705_s15, 11 }
  0x43   : > { %s845_s10 = scalar_lea.hbm %s962_s0, %s477_s22  ;;  %s166_s11 = sshll.u32 %s152_s7, 4  ;;  %s847_s11 = int_to_ptr.vmem [resolvable:$true] %s166_s11 }
  0x44   : > { %s607_s17 = scalar_lea.hbm %s845_s10, %s834_s29  ;;  %s611_s27 = scalar_lea.hbm %s962_s0, 3072 }
  0x45   : > { %p608_p11 = scmp.ne.s32.totalorder %s845_s10, %s607_s17  ;;  %p612_p2 = scmp.lt.u32.totalorder %s845_s10, %s962_s0 }
  0x46   : > { %p613_p3 = scmp.lt.u32.totalorder %s611_s27, %s607_s17  ;;  %p615_p8 = scmp.lt.u32.totalorder %s607_s17, %s845_s10 }
  0x47   : > { %p609_p12 = pnand %p608_p11, %p450_p6 }
  0x48   : > { %p614_p7 = por %p613_p3, %p612_p2 }
  0x49   : > { %p610_p13 = pneg %p609_p12 }
  0x4a   : > { %p616_p9 = por %p615_p8, %p614_p7 }
  0x4c   : > { %p617_p10 = pnand %p616_p9, %p610_p13 }
  0x4e   : > { %620 = shalt.err (!%p617_p10)
}
  0x4f   : > { %s621_s5 = scalar_lea.vmem %s847_s11, %s834_s29  ;;  %s710_s28 = smov [#allocation2]  }
  0x50   : > { %p622_p1 = scmp.ne.s32.totalorder %s847_s11, %s621_s5  ;;  %s625_s7 = sshll.u32 %s710_s28, 4  ;;  %s626_s7 = int_to_ptr.vmem [resolvable:$false] %s625_s7 }
  0x51   : > { %s627_s22 = scalar_lea.vmem %s626_s7, 512  ;;  %p628_p11 = scmp.lt.s32.totalorder %s847_s11, %s626_s7 }
  0x52   : > { %p623_p4 = pnand %p622_p1, %p450_p6  ;;  %p629_p12 = scmp.lt.s32.totalorder %s627_s22, %s621_s5 }
  0x54   : > { %p624_p5 = pneg %p623_p4  ;;  %p630_p2 = por %p629_p12, %p628_p11 }
  0x56   : > { %p631_p3 = pnand %p630_p2, %p624_p5 }
  0x58   : > { %634 = shalt.err (!%p631_p3)
}
  0x59   : > { %s711_s8 = smov 1024   ;;  %s712_s9 = smov 128  }
  0x5a   : > { %s713_s17 = smov 8  }
  0x5b   : > { %172 = dma.hbm_to_vmem [thread:$0]  (%p450_p6), %s845_s10, %s834_s29, %s847_s11, %s837_s6, %s711_s8, %s712_s9, %s713_s17  }
  0x5c PF: > { %p976_p13 = scmp.ne.s32.totalorder %s973_s26, 0 }
  0x5d   : > { %s877_s19 = sand.u32 (!%p976_p13), 1, %s697_s13   ;;  %p977_p7 = scmp.ne.s32.totalorder (!%p976_p13), %s970_s23, 0 }
  0x5e   : > { %178 = sbr.rel (%p976_p13) target bundleno = 426 (0x1aa), region = 32  ;;  %s456_s20 = sshll.u32 (!%p976_p13), %s877_s19, 4 }
  0x5f   : > { %s181_s27 = scalar_lea.sflag (!%p976_p13), [#allocation3], %s877_s19  ;;  %s883_s30 = scalar_lea.vmem (!%p976_p13), [#allocation2], %s456_s20 }
  0x65   : > { %680 = dma.done.wait (%p977_p7), %s181_s27, 256  }
  0x66   : > { %682 = vsyncadd (%p977_p7), %s181_s27, 4294967040  ;;  %p978_p6 = scmp.eq.s32.totalorder %s760_s16, 0 }
  0x68   : > { %684 = dma.done.wait (%p978_p6), [#allocation6], 1024   ;;  %p979_p8 = pmov %p978_p6 }
  0x69   : > { %v714_v0 = vmov 0.0   ;;  %vm715_vm0 = vmmov 0   ;;  %v567_v1 = vld [vmem:[#allocation5] sm:$0xff]   ;;  %v568_v2 = vld [vmem:[#allocation5 + $0x8] sm:$0xff]   ;;  %v569_v3 = vld [vmem:[#allocation5 + $0x10] sm:$0xff]   ;;  %v243_v12 = vlaneseq  ;;  %s210_s29 = scalar_lea.vmem [#allocation7], %s456_s20 }
  0x6a   : > { %686 = vsyncadd (%p979_p8), [#allocation6], 4294966272  ;;  %488 = vmatprep.subr.bf16.mxu0 %v714_v0  ;;  %504 = vmatprep.mubr.msk.bf16.mxu0 %vm715_vm0, %v714_v0  ;;  %v570_v4 = vld [vmem:[#allocation5 + $0x18] sm:$0xff]   ;;  %v571_v5 = vld [vmem:[#allocation5 + $0x20] sm:$0xff]   ;;  %s341_s6 = scalar_lea.sflag [#allocation4], %s877_s19  ;;  %p980_p9 = scmp.ne.s32.totalorder %s971_s24, 0 }
  0x6b   : > { %489 = vmatpush3.bf16.xpose.msra.mxu0 %v567_v1  ;;  %v572_v6 = vld [vmem:[#allocation5 + $0x28] sm:$0xff]   ;;  %v573_v7 = vld [vmem:[#allocation5 + $0x30] sm:$0xff]   ;;  %v574_v8 = vld [vmem:[#allocation5 + $0x38] sm:$0xff]   ;;  %v244_v13 = vshrl.u32 %v243_v12, 7  ;;  %s468_s10 = sshll.u32 (%p980_p9), %s760_s16, 1 }
  0x6c   : > { %490 = vmatprep.subr.bf16.mxu0 %v714_v0  ;;  %v222_v9 = vld [vmem:[%s883_s30] sm:$0xff]  ;;  %v223_v10 = vld [vmem:[%s883_s30 + $0x8] sm:$0xff]  ;;  %s349_s11 = ssub.s32 (%p980_p9), 3, %s468_s10 }
  0x6d   : > { %v224_v11 = vpack.c.bf16 %v223_v10, %v222_v9  ;;  %v241_v14 = vld [vmem:[%s964_s2] sm:$0x1]  ;;  %v245_v16 = vsub.s32 0, %v244_v13  ;;  %p350_p10 = scmp.lt.s32.totalorder (%p980_p9), %s349_s11, 2 }
  0x6e   : > { %v242_v15 = vunpack.c.l.bf16 %v241_v14 }
  0x70   : > { %v246_v17 = vrot.slane %v242_v15, %v245_v16 }
  0x73   : > { %491 = vmatpush3.bf16.xpose.msra.mxu0 %v568_v2 }
  0x74   : > { %492 = vmatprep.subr.bf16.mxu0 %v714_v0 }
  0x7b   : > { %493 = vmatpush3.bf16.xpose.msra.mxu0 %v569_v3 }
  0x7c   : > { %494 = vmatprep.subr.bf16.mxu0 %v714_v0 }
  0x83   : > { %495 = vmatpush3.bf16.xpose.msra.mxu0 %v570_v4 }
  0x84   : > { %496 = vmatprep.subr.bf16.mxu0 %v714_v0 }
  0x8b   : > { %497 = vmatpush3.bf16.xpose.msra.mxu0 %v571_v5 }
  0x8c   : > { %498 = vmatprep.subr.bf16.mxu0 %v714_v0 }
  0x93   : > { %499 = vmatpush3.bf16.xpose.msra.mxu0 %v572_v6 }
  0x94   : > { %500 = vmatprep.subr.bf16.mxu0 %v714_v0 }
  0x9b   : > { %501 = vmatpush3.bf16.xpose.msra.mxu0 %v573_v7 }
  0x9c   : > { %502 = vmatprep.subr.bf16.mxu0 %v714_v0 }
  0xa3   : > { %503 = vmatpush3.bf16.xpose.msra.mxu0 %v574_v8 }
  0xaa   : > { %505 = vmatmul.mubr.bf16.vlgmr.msra.gmra.mrb[0].mxu0 %v224_v11 }
 0x17d   : > { %v329_v18 = vpop.f32.mrb[0].mxu0 }
 0x17e   : > { %v330_v19 = vadd.f32 %v329_v18, %v246_v17  ;;  %v506_v20 = vpop.f32.mrb[1].mxu0 }
 0x17f   : > { %v332_v21 = vpop.f32.mrb[2].mxu0 }
 0x180   : > { %575 = vtanh.f32 %v330_v19  ;;  %v333_v22 = vadd.f32 %v332_v21, %v246_v17  ;;  %v507_v23 = vpop.f32.mrb[3].mxu0 }
 0x182   : > { %577 = vtanh.f32 %v333_v22 }
 0x187   : > { %347 = sbr.rel (!%p980_p9) target bundleno = 426 (0x1aa), region = 44 }
 0x18a   : > { %v576_v24 = vpop.eup %575 }
 0x18b   : > { %338 = vst [vmem:[%s210_s29] sm:$0xff] %v576_v24 }
 0x18c   : > { %v578_v25 = vpop.eup %577 }
 0x18d   : > { %339 = vst [vmem:[%s210_s29 + $0x8] sm:$0xff] %v578_v25 }
 0x18e   : > { %s989_s11 = smov (!%p350_p10, %s349_s11), 2 }
 0x18f   : > { %s904_s4 = sshll.u32 %s989_s11, 7 }
 0x190   : > { %s354_s5 = ssub.s32 256, %s904_s4 }
 0x191   : > { %355 = vsyncadd %s341_s6, %s354_s5  ;;  %p470_p1 = scmp.ne.s32.totalorder %s904_s4, 0  ;;  %s478_s28 = sshll.u32 %s760_s16, 8 }
 0x192   : > { %s914_s22 = scalar_lea.hbm %s965_s3, %s478_s28  ;;  %s360_s8 = sshll.u32 %s210_s29, 4  ;;  %s916_s8 = int_to_ptr.vmem [resolvable:$true] %s360_s8 }
 0x193   : > { %s635_s9 = scalar_lea.vmem %s916_s8, %s904_s4  ;;  %s716_s17 = smov [#allocation7]  }
 0x194   : > { %p636_p4 = scmp.ne.s32.totalorder %s916_s8, %s635_s9  ;;  %s639_s20 = sshll.u32 %s716_s17, 4  ;;  %s640_s20 = int_to_ptr.vmem [resolvable:$false] %s639_s20 }
 0x195   : > { %s641_s16 = scalar_lea.vmem %s640_s20, 512  ;;  %p642_p12 = scmp.lt.s32.totalorder %s916_s8, %s640_s20 }
 0x196   : > { %p637_p5 = pnand %p636_p4, %p470_p1  ;;  %p643_p2 = scmp.lt.s32.totalorder %s641_s16, %s635_s9 }
 0x198   : > { %p638_p11 = pneg %p637_p5  ;;  %p644_p3 = por %p643_p2, %p642_p12 }
 0x19a   : > { %p645_p13 = pnand %p644_p3, %p638_p11 }
 0x19c   : > { %648 = shalt.err (!%p645_p13)
}
 0x19d   : > { %s649_s27 = scalar_lea.hbm %s914_s22, %s904_s4  ;;  %s653_s26 = scalar_lea.hbm %s965_s3, 384 }
 0x19e   : > { %p650_p7 = scmp.ne.s32.totalorder %s914_s22, %s649_s27  ;;  %p654_p9 = scmp.lt.u32.totalorder %s914_s22, %s965_s3 }
 0x19f   : > { %p655_p10 = scmp.lt.u32.totalorder %s653_s26, %s649_s27  ;;  %p657_p5 = scmp.lt.u32.totalorder %s649_s27, %s914_s22 }
 0x1a0   : > { %p651_p6 = pnand %p650_p7, %p470_p1 }
 0x1a1   : > { %p656_p4 = por %p655_p10, %p654_p9 }
 0x1a2   : > { %p652_p8 = pneg %p651_p6 }
 0x1a3   : > { %p658_p11 = por %p657_p5, %p656_p4 }
 0x1a5   : > { %p659_p12 = pnand %p658_p11, %p652_p8 }
 0x1a7   : > { %662 = shalt.err (!%p659_p12)
}
 0x1a8   : > { %s717_s11 = smov 128   ;;  %s718_s5 = smov 8  }
 0x1a9   : > { %366 = dma.vmem_to_hbm [thread:$0]  (%p470_p1), %s916_s8, %s904_s4, %s914_s22, %s341_s6, %s717_s11, %s717_s11, %s718_s5  }
 0x1aa PF: > { %s375_s28 = sand.u32 1, %s693_s12   ;;  %p981_p2 = scmp.ne.s32.totalorder %s972_s25, 0 }
 0x1ab   : > { %s376_s24 = scalar_lea.sflag [#allocation4], %s375_s28 }
 0x1ac   : > { %p519_p3 = pnand %p446_p0, %p981_p2 }
 0x1ae   : > { %688 = dma.done.wait (!%p519_p3), %s376_s24, 256  }
 0x1af   : > { %690 = vsyncadd (!%p519_p3), %s376_s24, 4294967040  ;;  %p17_p13 = scmp.ge.s32.totalorder %s764_s18, 4   ;;  %s982_s12 = smov %s697_s13 }
 0x1b0   : > { %s983_s13 = smov %s701_s14  ;;  %s984_s14 = smov %s776_s21 }
 0x1b1   : > { %s985_s15 = smov %s764_s18  ;;  %19 = sbr.rel (!%p17_p13) target bundleno = 6 (0x6), region = 81 }
 0x1b8   :  { %381 = vsyncpa [#allocation3], 1 }
 0x1b9   :  { %383 = vsyncpa [#allocation3 + $0x1], 1 }
 0x1ba   :  { %384 = vsyncpa [#allocation6], 1 }
 0x1bb   :  { %385 = vsyncpa [#allocation4], 1 }
 0x1bc   :  { %387 = vsyncpa [#allocation4 + $0x1], 1 }

// kernel: tpu_custom_call.1
= control target key start
LH: loop header
LB: loop body
LE: loop exit
PB: predicated region body
PF: predicated region fallthrough
CT: control target
= control target key end

     0   :  { %8 = vsyncpa [#allocation3], 0  ;;  %s962_s0 = inlined_call_operand.hbm [shape: f32[20,1024], index: 0, kind: input, shape index: {}]   ;;  %s963_s1 = inlined_call_operand.hbm [shape: bf16[128,128], index: 1, kind: input, shape index: {}]   ;;  %s964_s2 = inlined_call_operand.vmem [shape: bf16[1,128], index: 2, kind: input, shape index: {}]   ;;  %s965_s3 = inlined_call_operand.hbm [shape: f32[20,128], index: 3, kind: output, shape index: {}]  }
   0x1   :  { %10 = vsyncpa [#allocation3 + $0x1], 0 }
   0x2   :  { %11 = vsyncpa [#allocation6], 0 }
   0x3   :  { %12 = vsyncpa [#allocation4], 0 }
   0x4   :  { %14 = vsyncpa [#allocation4 + $0x1], 0  ;;  %s739_s12 = smov 0   ;;  %s741_s13 = smov 0  }
   0x5   :  { %s743_s14 = smov 0   ;;  %s745_s15 = smov 0  }
   0x6 LB: > { %s760_s16 = sadd.s32 4294967295, %s705_s15   ;;  %s443_s17 = sadd.s32 4294967294, %s705_s15   ;;  %s705_s15 = sphi %s745_s15, %s985_s15   ;;  %s701_s14 = sphi %s743_s14, %s984_s14   ;;  %s697_s13 = sphi %s741_s13, %s983_s13   ;;  %s693_s12 = sphi %s739_s12, %s982_s12  }
   0x7   : > { %s764_s18 = sadd.s32 1, %s705_s15   ;;  %s27_s19 = sadd.s32 1, %s701_s14 }
   0x8   : > { %s24_s20 = ssub.s32 %s705_s15, %s764_s18  ;;  %p34_p0 = scmp.ne.s32.totalorder %s701_s14, %s697_s13 }
   0x9   : > { %p25_p1 = scmp.eq.s32.totalorder %s24_s20, 0  ;;  %p35_p2 = scmp.eq.s32.totalorder %s705_s15, 0 }
   0xa   : > { %p40_p3 = scmp.ne.s32.totalorder %s697_s13, %s693_s12  ;;  %p966_p4 = scmp.eq.s32.totalorder %s760_s16, 0 }
   0xb   : > { %s776_s21 = scalar_select %p25_p1, %s701_s14, %s27_s19  }
   0xc   : > { %p778_p5 = por %p35_p2, %p34_p0  ;;  %p784_p6 = por %p966_p4, %p40_p3 }
   0xd   : > { %p106_p7 = scmp.eq.s32.totalorder %s760_s16, 1  ;;  %p112_p8 = scmp.eq.s32.totalorder %s443_s17, 1 }
   0xe   : > { %s969_s22 = scalar_select %p778_p5, 1, 0 }
   0xf   : > { %s970_s23 = scalar_select %p784_p6, 1, 0 }
  0x10   : > { %p444_p9 = scmp.ge.s32.totalorder %s705_s15, 1  ;;  %p119_p10 = scmp.lt.s32.totalorder %s705_s15, 3 }
  0x11   : > { %p791_p11 = por %p106_p7, %p34_p0  ;;  %p795_p12 = por %p112_p8, %p40_p3 }
  0x12   : > { %p799_p13 = pnand %p444_p9, %p119_p10  ;;  %s707_s27 = smov [#allocation5]  }
  0x13   : > { %s971_s24 = scalar_select %p791_p11, 1, 0 }
  0x14   : > { %s972_s25 = scalar_select %p795_p12, 1, 0 }
  0x15   : > { %s973_s26 = scalar_select %p799_p13, 1, 0 }
  0x16   : > { %p514_p1 = pneg %p799_p13  ;;  %s131_s28 = sshll.u32 %s707_s27, 4  ;;  %s132_s28 = int_to_ptr.vmem [resolvable:$true] %s131_s28 }
  0x17   : > { %s579_s5 = scalar_lea.hbm %s963_s1, 1024 }
  0x18   : > { %p807_p2 = pnand %p514_p1, %p966_p4  ;;  %p580_p0 = scmp.ne.s32.totalorder %s963_s1, %s579_s5 }
  0x19   : > { %p586_p9 = scmp.lt.u32.totalorder %s579_s5, %s963_s1 }
  0x1a   : > { %p581_p3 = pneg %p807_p2 }
  0x1c   : > { %p582_p7 = pnand %p581_p3, %p580_p0 }
  0x1e   : > { %p583_p8 = pneg %p582_p7 }
  0x20   : > { %p588_p10 = pnand %p586_p9, %p583_p8 }
  0x22   : > { %591 = shalt.err (!%p588_p10)
}
  0x23   : > { %s592_s10 = scalar_lea.vmem %s132_s28, 1024  ;;  %p600_p11 = scmp.lt.s32.totalorder %s132_s28, %s132_s28 }
  0x24   : > { %p593_p1 = scmp.ne.s32.totalorder %s132_s28, %s592_s10  ;;  %p601_p6 = scmp.lt.s32.totalorder %s592_s10, %s592_s10 }
  0x26   : > { %p595_p4 = pnand %p593_p1, %p581_p3  ;;  %p602_p13 = por %p601_p6, %p600_p11 }
  0x28   : > { %p596_p12 = pneg %p595_p4 }
  0x2a   : > { %p603_p5 = pnand %p602_p13, %p596_p12 }
  0x2c   : > { %606 = shalt.err (!%p603_p5)
}
  0x2d   : > { %s708_s11 = smov 64   ;;  %s709_s17 = smov 4  }
  0x2e   : > { %517 = dma.hbm_to_vmem [thread:$0]  (!%p807_p2), %s963_s1, 1024, %s132_s28, [#allocation6], %s708_s11, %s708_s11, %s709_s17  }
  0x2f   : > { %p446_p0 = scmp.ge.s32.totalorder %s705_s15, 2 }
  0x30   : > { %p975_p4 = scmp.ne.s32.totalorder (!%p446_p0), %s969_s22, 0 }
  0x31   : > { %144 = sbr.rel (%p446_p0) target bundleno = 92 (0x5c), region = 24 }
  0x38   : > { %147 = sbr.rel (!%p975_p4) target bundleno = 92 (0x5c), region = 28  ;;  %s148_s27 = sand.u32 (%p975_p4), 1, %s701_s14  }
  0x39   : > { %s448_s30 = sshll.u32 (%p975_p4), %s705_s15, 1  ;;  %s447_s4 = sshll.u32 (%p975_p4), %s148_s27, 4 }
  0x3a   : > { %s154_s5 = ssub.s32 (%p975_p4), 3, %s448_s30  ;;  %s837_s6 = scalar_lea.sflag (%p975_p4), [#allocation3], %s148_s27 }
  0x3b   : > { %p155_p5 = scmp.lt.s32.totalorder (%p975_p4), %s154_s5, 2  ;;  %s152_s7 = scalar_lea.vmem (%p975_p4), [#allocation2], %s447_s4 }
  0x3f   : > { %s987_s5 = smov (!%p155_p5, %s154_s5), 2 }
  0x40   : > { %s834_s29 = sshll.u32 %s987_s5, 7 }
  0x41   : > { %s159_s28 = ssub.s32 256, %s834_s29 }
  0x42   : > { %160 = vsyncadd %s837_s6, %s159_s28  ;;  %p450_p6 = scmp.ne.s32.totalorder %s834_s29, 0  ;;  %s477_s22 = sshll.u32 %s705_s15, 11 }
  0x43   : > { %s845_s10 = scalar_lea.hbm %s962_s0, %s477_s22  ;;  %s166_s11 = sshll.u32 %s152_s7, 4  ;;  %s847_s11 = int_to_ptr.vmem [resolvable:$true] %s166_s11 }
  0x44   : > { %s607_s17 = scalar_lea.hbm %s845_s10, %s834_s29  ;;  %s611_s27 = scalar_lea.hbm %s962_s0, 3072 }
  0x45   : > { %p608_p11 = scmp.ne.s32.totalorder %s845_s10, %s607_s17  ;;  %p612_p2 = scmp.lt.u32.totalorder %s845_s10, %s962_s0 }
  0x46   : > { %p613_p3 = scmp.lt.u32.totalorder %s611_s27, %s607_s17  ;;  %p615_p8 = scmp.lt.u32.totalorder %s607_s17, %s845_s10 }
  0x47   : > { %p609_p12 = pnand %p608_p11, %p450_p6 }
  0x48   : > { %p614_p7 = por %p613_p3, %p612_p2 }
  0x49   : > { %p610_p13 = pneg %p609_p12 }
  0x4a   : > { %p616_p9 = por %p615_p8, %p614_p7 }
  0x4c   : > { %p617_p10 = pnand %p616_p9, %p610_p13 }
  0x4e   : > { %620 = shalt.err (!%p617_p10)
}
  0x4f   : > { %s621_s5 = scalar_lea.vmem %s847_s11, %s834_s29  ;;  %s710_s28 = smov [#allocation2]  }
  0x50   : > { %p622_p1 = scmp.ne.s32.totalorder %s847_s11, %s621_s5  ;;  %s625_s7 = sshll.u32 %s710_s28, 4  ;;  %s626_s7 = int_to_ptr.vmem [resolvable:$false] %s625_s7 }
  0x51   : > { %s627_s22 = scalar_lea.vmem %s626_s7, 512  ;;  %p628_p11 = scmp.lt.s32.totalorder %s847_s11, %s626_s7 }
  0x52   : > { %p623_p4 = pnand %p622_p1, %p450_p6  ;;  %p629_p12 = scmp.lt.s32.totalorder %s627_s22, %s621_s5 }
  0x54   : > { %p624_p5 = pneg %p623_p4  ;;  %p630_p2 = por %p629_p12, %p628_p11 }
  0x56   : > { %p631_p3 = pnand %p630_p2, %p624_p5 }
  0x58   : > { %634 = shalt.err (!%p631_p3)
}
  0x59   : > { %s711_s8 = smov 1024   ;;  %s712_s9 = smov 128  }
  0x5a   : > { %s713_s17 = smov 8  }
  0x5b   : > { %172 = dma.hbm_to_vmem [thread:$0]  (%p450_p6), %s845_s10, %s834_s29, %s847_s11, %s837_s6, %s711_s8, %s712_s9, %s713_s17  }
  0x5c PF: > { %p976_p13 = scmp.ne.s32.totalorder %s973_s26, 0 }
  0x5d   : > { %s877_s19 = sand.u32 (!%p976_p13), 1, %s697_s13   ;;  %p977_p7 = scmp.ne.s32.totalorder (!%p976_p13), %s970_s23, 0 }
  0x5e   : > { %178 = sbr.rel (%p976_p13) target bundleno = 426 (0x1aa), region = 32  ;;  %s456_s20 = sshll.u32 (!%p976_p13), %s877_s19, 4 }
  0x5f   : > { %s181_s27 = scalar_lea.sflag (!%p976_p13), [#allocation3], %s877_s19  ;;  %s883_s30 = scalar_lea.vmem (!%p976_p13), [#allocation2], %s456_s20 }
  0x65   : > { %680 = dma.done.wait (%p977_p7), %s181_s27, 256  }
  0x66   : > { %682 = vsyncadd (%p977_p7), %s181_s27, 4294967040  ;;  %p978_p6 = scmp.eq.s32.totalorder %s760_s16, 0 }
  0x68   : > { %684 = dma.done.wait (%p978_p6), [#allocation6], 1024   ;;  %p979_p8 = pmov %p978_p6 }
  0x69   : > { %v714_v0 = vmov 0.0   ;;  %vm715_vm0 = vmmov 0   ;;  %v567_v1 = vld [vmem:[#allocation5] sm:$0xff]   ;;  %v568_v2 = vld [vmem:[#allocation5 + $0x8] sm:$0xff]   ;;  %v569_v3 = vld [vmem:[#allocation5 + $0x10] sm:$0xff]   ;;  %v243_v12 = vlaneseq  ;;  %s210_s29 = scalar_lea.vmem [#allocation7], %s456_s20 }
  0x6a   : > { %686 = vsyncadd (%p979_p8), [#allocation6], 4294966272  ;;  %488 = vmatprep.subr.bf16.mxu0 %v714_v0  ;;  %504 = vmatprep.mubr.msk.bf16.mxu0 %vm715_vm0, %v714_v0  ;;  %v570_v4 = vld [vmem:[#allocation5 + $0x18] sm:$0xff]   ;;  %v571_v5 = vld [vmem:[#allocation5 + $0x20] sm:$0xff]   ;;  %s341_s6 = scalar_lea.sflag [#allocation4], %s877_s19  ;;  %p980_p9 = scmp.ne.s32.totalorder %s971_s24, 0 }
  0x6b   : > { %489 = vmatpush3.bf16.xpose.msra.mxu0 %v567_v1  ;;  %v572_v6 = vld [vmem:[#allocation5 + $0x28] sm:$0xff]   ;;  %v573_v7 = vld [vmem:[#allocation5 + $0x30] sm:$0xff]   ;;  %v574_v8 = vld [vmem:[#allocation5 + $0x38] sm:$0xff]   ;;  %v244_v13 = vshrl.u32 %v243_v12, 7  ;;  %s468_s10 = sshll.u32 (%p980_p9), %s760_s16, 1 }
  0x6c   : > { %490 = vmatprep.subr.bf16.mxu0 %v714_v0  ;;  %v222_v9 = vld [vmem:[%s883_s30] sm:$0xff]  ;;  %v223_v10 = vld [vmem:[%s883_s30 + $0x8] sm:$0xff]  ;;  %s349_s11 = ssub.s32 (%p980_p9), 3, %s468_s10 }
  0x6d   : > { %v224_v11 = vpack.c.bf16 %v223_v10, %v222_v9  ;;  %v241_v14 = vld [vmem:[%s964_s2] sm:$0x1]  ;;  %v245_v16 = vsub.s32 0, %v244_v13  ;;  %p350_p10 = scmp.lt.s32.totalorder (%p980_p9), %s349_s11, 2 }
  0x6e   : > { %v242_v15 = vunpack.c.l.bf16 %v241_v14 }
  0x70   : > { %v246_v17 = vrot.slane %v242_v15, %v245_v16 }
  0x73   : > { %491 = vmatpush3.bf16.xpose.msra.mxu0 %v568_v2 }
  0x74   : > { %492 = vmatprep.subr.bf16.mxu0 %v714_v0 }
  0x7b   : > { %493 = vmatpush3.bf16.xpose.msra.mxu0 %v569_v3 }
  0x7c   : > { %494 = vmatprep.subr.bf16.mxu0 %v714_v0 }
  0x83   : > { %495 = vmatpush3.bf16.xpose.msra.mxu0 %v570_v4 }
  0x84   : > { %496 = vmatprep.subr.bf16.mxu0 %v714_v0 }
  0x8b   : > { %497 = vmatpush3.bf16.xpose.msra.mxu0 %v571_v5 }
  0x8c   : > { %498 = vmatprep.subr.bf16.mxu0 %v714_v0 }
  0x93   : > { %499 = vmatpush3.bf16.xpose.msra.mxu0 %v572_v6 }
  0x94   : > { %500 = vmatprep.subr.bf16.mxu0 %v714_v0 }
  0x9b   : > { %501 = vmatpush3.bf16.xpose.msra.mxu0 %v573_v7 }
  0x9c   : > { %502 = vmatprep.subr.bf16.mxu0 %v714_v0 }
  0xa3   : > { %503 = vmatpush3.bf16.xpose.msra.mxu0 %v574_v8 }
  0xaa   : > { %505 = vmatmul.mubr.bf16.vlgmr.msra.gmra.mrb[0].mxu0 %v224_v11 }
 0x17d   : > { %v329_v18 = vpop.f32.mrb[0].mxu0 }
 0x17e   : > { %v330_v19 = vadd.f32 %v329_v18, %v246_v17  ;;  %v506_v20 = vpop.f32.mrb[1].mxu0 }
 0x17f   : > { %v332_v21 = vpop.f32.mrb[2].mxu0 }
 0x180   : > { %575 = vtanh.f32 %v330_v19  ;;  %v333_v22 = vadd.f32 %v332_v21, %v246_v17  ;;  %v507_v23 = vpop.f32.mrb[3].mxu0 }
 0x182   : > { %577 = vtanh.f32 %v333_v22 }
 0x187   : > { %347 = sbr.rel (!%p980_p9) target bundleno = 426 (0x1aa), region = 44 }
 0x18a   : > { %v576_v24 = vpop.eup %575 }
 0x18b   : > { %338 = vst [vmem:[%s210_s29] sm:$0xff] %v576_v24 }
 0x18c   : > { %v578_v25 = vpop.eup %577 }
 0x18d   : > { %339 = vst [vmem:[%s210_s29 + $0x8] sm:$0xff] %v578_v25 }
 0x18e   : > { %s989_s11 = smov (!%p350_p10, %s349_s11), 2 }
 0x18f   : > { %s904_s4 = sshll.u32 %s989_s11, 7 }
 0x190   : > { %s354_s5 = ssub.s32 256, %s904_s4 }
 0x191   : > { %355 = vsyncadd %s341_s6, %s354_s5  ;;  %p470_p1 = scmp.ne.s32.totalorder %s904_s4, 0  ;;  %s478_s28 = sshll.u32 %s760_s16, 8 }
 0x192   : > { %s914_s22 = scalar_lea.hbm %s965_s3, %s478_s28  ;;  %s360_s8 = sshll.u32 %s210_s29, 4  ;;  %s916_s8 = int_to_ptr.vmem [resolvable:$true] %s360_s8 }
 0x193   : > { %s635_s9 = scalar_lea.vmem %s916_s8, %s904_s4  ;;  %s716_s17 = smov [#allocation7]  }
 0x194   : > { %p636_p4 = scmp.ne.s32.totalorder %s916_s8, %s635_s9  ;;  %s639_s20 = sshll.u32 %s716_s17, 4  ;;  %s640_s20 = int_to_ptr.vmem [resolvable:$false] %s639_s20 }
 0x195   : > { %s641_s16 = scalar_lea.vmem %s640_s20, 512  ;;  %p642_p12 = scmp.lt.s32.totalorder %s916_s8, %s640_s20 }
 0x196   : > { %p637_p5 = pnand %p636_p4, %p470_p1  ;;  %p643_p2 = scmp.lt.s32.totalorder %s641_s16, %s635_s9 }
 0x198   : > { %p638_p11 = pneg %p637_p5  ;;  %p644_p3 = por %p643_p2, %p642_p12 }
 0x19a   : > { %p645_p13 = pnand %p644_p3, %p638_p11 }
 0x19c   : > { %648 = shalt.err (!%p645_p13)
}
 0x19d   : > { %s649_s27 = scalar_lea.hbm %s914_s22, %s904_s4  ;;  %s653_s26 = scalar_lea.hbm %s965_s3, 384 }
 0x19e   : > { %p650_p7 = scmp.ne.s32.totalorder %s914_s22, %s649_s27  ;;  %p654_p9 = scmp.lt.u32.totalorder %s914_s22, %s965_s3 }
 0x19f   : > { %p655_p10 = scmp.lt.u32.totalorder %s653_s26, %s649_s27  ;;  %p657_p5 = scmp.lt.u32.totalorder %s649_s27, %s914_s22 }
 0x1a0   : > { %p651_p6 = pnand %p650_p7, %p470_p1 }
 0x1a1   : > { %p656_p4 = por %p655_p10, %p654_p9 }
 0x1a2   : > { %p652_p8 = pneg %p651_p6 }
 0x1a3   : > { %p658_p11 = por %p657_p5, %p656_p4 }
 0x1a5   : > { %p659_p12 = pnand %p658_p11, %p652_p8 }
 0x1a7   : > { %662 = shalt.err (!%p659_p12)
}
 0x1a8   : > { %s717_s11 = smov 128   ;;  %s718_s5 = smov 8  }
 0x1a9   : > { %366 = dma.vmem_to_hbm [thread:$0]  (%p470_p1), %s916_s8, %s904_s4, %s914_s22, %s341_s6, %s717_s11, %s717_s11, %s718_s5  }
 0x1aa PF: > { %s375_s28 = sand.u32 1, %s693_s12   ;;  %p981_p2 = scmp.ne.s32.totalorder %s972_s25, 0 }
 0x1ab   : > { %s376_s24 = scalar_lea.sflag [#allocation4], %s375_s28 }
 0x1ac   : > { %p519_p3 = pnand %p446_p0, %p981_p2 }
 0x1ae   : > { %688 = dma.done.wait (!%p519_p3), %s376_s24, 256  }
 0x1af   : > { %690 = vsyncadd (!%p519_p3), %s376_s24, 4294967040  ;;  %p17_p13 = scmp.ge.s32.totalorder %s764_s18, 4   ;;  %s982_s12 = smov %s697_s13 }
 0x1b0   : > { %s983_s13 = smov %s701_s14  ;;  %s984_s14 = smov %s776_s21 }
 0x1b1   : > { %s985_s15 = smov %s764_s18  ;;  %19 = sbr.rel (!%p17_p13) target bundleno = 6 (0x6), region = 81 }
 0x1b8   :  { %381 = vsyncpa [#allocation3], 1 }
 0x1b9   :  { %383 = vsyncpa [#allocation3 + $0x1], 1 }
 0x1ba   :  { %384 = vsyncpa [#allocation6], 1 }
 0x1bb   :  { %385 = vsyncpa [#allocation4], 1 }
 0x1bc   :  { %387 = vsyncpa [#allocation4 + $0x1], 1 }

</bundles_post_ra>
